<compile_context>
chip_gen: v7x
topology: tpu7x:2x2x1
jax: 0.10.0
libtpu: 0.0.40
codegen_flags: <defaults>
</compile_context>

<pallas_src>
import functools

import numpy as np
import jax
import jax.numpy as jnp
from jax.experimental import pallas as pl
from jax.experimental.pallas import tpu as pltpu

EPS = 1e-4      # LipsNet default eps
LANE = 128


def _round_up(n, m):
    return ((n + m - 1) // m) * m


def lipsnet_kernel(k_ref, x_ref, w1_ref, b1_ref, w2_ref, b2_ref, g_ref, o_ref,
                   *, matmul_dtype, exact_recip):
    k = k_ref[0]                              # softplus(k_init): global Lipschitz bound
    x = x_ref[...].astype(matmul_dtype)       # (tb, In)  raw input, cast in-kernel
    w1 = w1_ref[...]                          # (In, H)   matmul dtype
    b1 = b1_ref[...]                          # (1, H)    f32
    w2 = w2_ref[...]                          # (H, Outp) matmul dtype
    b2 = b2_ref[...]                          # (1, Outp) f32
    g = g_ref[...]                            # (H, H)    f32 (feeds the 1/||J|| denom)

    # f_net forward: MXU matmuls with f32 accumulation; elementwise epilogue f32
    # (v5e has no bf16 VPU/EUP path).
    z1 = jnp.dot(x, w1, preferred_element_type=jnp.float32) + b1        # (tb, H)
    h = jnp.maximum(z1, 0.0)                                            # ReLU
    m = (z1 > 0.0).astype(jnp.float32)                                  # ReLU'(z1)
    f_out = jnp.dot(h.astype(w2.dtype), w2,
                    preferred_element_type=jnp.float32) + b2            # (tb, Outp)

    # ||J_b||_F^2 = m_b^T G m_b   with G = (W1^T W1)*(W2 W2^T) hoisted out of the grid.
    gm = jnp.dot(m, g, preferred_element_type=jnp.float32)              # (tb, H), f32
    jac_norm = jnp.sqrt(jnp.sum(gm * m, axis=-1, keepdims=True))        # (tb, 1)

    denom = jac_norm + EPS
    if exact_recip:                                                     # f32 path: exact
        act = jnp.tanh((k * f_out) / denom)
    else:                                                               # bf16 path: EUP recip
        act = jnp.tanh((k * f_out) * pl.reciprocal(denom, approx=True))

    # Store transposed: batch on the lane axis -> lane-dense, unmasked stores,
    # and only Outp (=8) sublanes of writeback per tile instead of 128 lanes.
    o_ref[...] = jnp.transpose(act).astype(o_ref.dtype)                 # (Outp, tb)


def _lipsnet_forward(x, w1, b1, w2, b2, k, *, matmul_dtype=jnp.bfloat16, tb=None):
    B, In = x.shape
    In2, H = w1.shape
    H2, Out = w2.shape
    assert In2 == In and H2 == H

    # Output padded only to a sublane multiple (8), never to 128: the result is
    # stored transposed so the batch carries the lane dimension.
    Outp = _round_up(Out, 8)

    # --- batch tiling -------------------------------------------------------
    # Tiny batch: single grid step (per-step overhead dominates).  Otherwise an
    # even number (>=2) of 128-multiple tiles of up to 1024 rows, so v7x's two
    # TensorCores both get work and HBM-roofline efficiency stays high.
    Bmin = _round_up(B, 16)                 # 16-row rounding: bf16 sublane packing
    if tb is None:
        if Bmin <= 256:
            tb_ = Bmin
        else:
            nsteps = 2 * pl.cdiv(Bmin, 2 * 1024)
            tb_ = _round_up(pl.cdiv(Bmin, nsteps), LANE)
    else:
        tb_ = min(_round_up(int(tb), 16), Bmin)
    if tb_ < Bmin:
        tb_ = _round_up(tb_, LANE)          # multi-step: lane-dense transposed out blocks
    else:
        tb_ = Bmin
    Bp = _round_up(B, tb_)

    # --- operand prep (fused inside jit; weights are frozen in eval mode) ----
    x_in = x                                # raw dtype, unpadded features
    if Bp != B:
        x_in = jnp.pad(x_in, ((0, Bp - B), (0, 0)))   # batch pad only

    w1f = w1.astype(jnp.float32)
    w2f = w2.astype(jnp.float32)
    # Batch-independent Gram product, kept in f32 (it sits in the denominator).
    g1 = jnp.dot(w1f.T, w1f, precision=jax.lax.Precision.HIGHEST)       # W1^T W1
    g2 = jnp.dot(w2f, w2f.T, precision=jax.lax.Precision.HIGHEST)       # W2 W2^T
    g = g1 * g2                                                         # (H, H), f32

    pad_o = Outp - Out
    w1m = w1f.astype(matmul_dtype)                                      # (In, H)
    b1f = b1.reshape(1, H).astype(jnp.float32)                          # (1, H)
    w2m = jnp.pad(w2f, ((0, 0), (0, pad_o))).astype(matmul_dtype)       # (H, Outp)
    b2f = jnp.pad(b2.reshape(1, Out).astype(jnp.float32), ((0, 0), (0, pad_o)))
    kk = jnp.asarray(k, jnp.float32).reshape((1,))

    exact_recip = (np.dtype(matmul_dtype) == np.dtype(jnp.float32))
    kernel = functools.partial(lipsnet_kernel, matmul_dtype=matmul_dtype,
                               exact_recip=exact_recip)

    # VMEM budget (double-buffered tiles + resident weights) with headroom;
    # clamp to 32 MiB so it is valid on v7x (64 MiB physical) as well.
    msz = np.dtype(matmul_dtype).itemsize
    xsz = np.dtype(x.dtype).itemsize
    est_bytes = (2 * tb_ * In * xsz                    # x tile (x2 buffers, raw dtype)
                 + 2 * Outp * tb_ * 4                  # out tile (x2 buffers, f32)
                 + 2 * (In * H + H * Outp) * msz       # W1, W2 (default double-buffered)
                 + 2 * H * H * 4                       # G (f32)
                 + 2 * (H + Outp) * 4)                 # biases
    vmem_limit = int(min(max(4 * est_bytes, 8 << 20), 32 << 20))

    out_t = pl.pallas_call(
        kernel,
        out_shape=jax.ShapeDtypeStruct((Outp, Bp), jnp.float32),
        grid=(Bp // tb_,),
        in_specs=[
            pl.BlockSpec(memory_space=pltpu.MemorySpace.SMEM),   # k scalar (1,)
            pl.BlockSpec((tb_, In), lambda i: (i, 0)),           # x: batch-tiled, full features
            # Grid-invariant operands below (constant index_map).  pl.Buffered(1)
            # would halve their tiny VMEM residency; skipped as negligible here.
            pl.BlockSpec((In, H), lambda i: (0, 0)),             # W1
            pl.BlockSpec((1, H), lambda i: (0, 0)),              # b1
            pl.BlockSpec((H, Outp), lambda i: (0, 0)),           # W2
            pl.BlockSpec((1, Outp), lambda i: (0, 0)),           # b2
            pl.BlockSpec((H, H), lambda i: (0, 0)),              # G = (W1^T W1)*(W2 W2^T)
        ],
        out_specs=pl.BlockSpec((Outp, tb_), lambda i: (0, i)),   # transposed, lane-dense
        compiler_params=pltpu.CompilerParams(
            dimension_semantics=("parallel",),
            vmem_limit_bytes=vmem_limit,
        ),
    )(kk, x_in, w1m, b1f, w2m, b2f, g)

    return out_t[:Out, :B].T                 # back to (batch, out)


# jit so the (tiny) prep ops fuse into one dispatch; matmul_dtype / tb are static.
lipsnet_forward = jax.jit(_lipsnet_forward, static_argnames=("matmul_dtype", "tb"))


if __name__ == "__main__":
    # f_sizes = (16, 32, 8): Linear(16,32) + ReLU + Linear(32,8) + Identity
    B, In, H, Out = 16, 16, 32, 8
    key = jax.random.PRNGKey(0)
    k1, k2, k3, k4, k5 = jax.random.split(key, 5)

    # Deterministic init mirroring the torch mlp() initializer:
    #   W1: kaiming_normal (relu follows)  -> std = sqrt(2 / fan_in)
    #   W2: xavier_normal  (Identity)      -> std = sqrt(2 / (fan_in + fan_out))
    #   biases: default Linear uniform(-1/sqrt(fan_in), 1/sqrt(fan_in))
    w1 = jax.random.normal(k1, (In, H), jnp.float32) * jnp.sqrt(2.0 / In)
    b1 = jax.random.uniform(k2, (1, H), jnp.float32, -1.0, 1.0) / jnp.sqrt(In)
    w2 = jax.random.normal(k3, (H, Out), jnp.float32) * jnp.sqrt(2.0 / (H + Out))
    b2 = jax.random.uniform(k4, (1, Out), jnp.float32, -1.0, 1.0) / jnp.sqrt(H)
    x = jax.random.normal(k5, (B, In), jnp.float32)

    # K_net with global_lips=True: k_out = softplus(k_init) broadcast over batch.
    k_init = 100.0
    k = jnp.asarray([jax.nn.softplus(jnp.float32(k_init))], dtype=jnp.float32)

    # --- 1) exact-semantics run (f32 matmuls, exact divide) vs autodiff ref ---
    out_f32 = jax.block_until_ready(
        lipsnet_forward(x, w1, b1, w2, b2, k, matmul_dtype=jnp.float32))

    def f_net(xx):
        return jax.nn.relu(xx @ w1 + b1[0]) @ w2 + b2[0]

    with jax.default_matmul_precision("highest"):                      # exact f32 reference
        jac = jax.vmap(jax.jacrev(f_net))(x)                           # (B, Out, In)
        f_ref = f_net(x)
    jac_norm = jnp.sqrt(jnp.sum(jac ** 2, axis=(1, 2)))[:, None]       # torch.norm(.,2,dim=(1,2))
    ref = jnp.tanh(k[0] * f_ref / (jac_norm + EPS))
    assert out_f32.shape == (B, Out)
    assert jnp.allclose(out_f32, ref, atol=1e-3, rtol=1e-3), "f32 kernel mismatch"

    # --- 2) default (bf16-matmul) run vs a cast-mirrored pure-JAX reference ---
    out_bf16 = jax.block_until_ready(lipsnet_forward(x, w1, b1, w2, b2, k))
    bf = jnp.bfloat16
    z1r = jnp.dot(x.astype(bf), w1.astype(bf), preferred_element_type=jnp.float32) + b1
    hr = jnp.maximum(z1r, 0.0)
    mr = (z1r > 0.0).astype(jnp.float32)
    fr = jnp.dot(hr.astype(bf), w2.astype(bf), preferred_element_type=jnp.float32) + b2
    gref = (w1.T @ w1) * (w2 @ w2.T)                                   # f32, matches kernel
    gmr = jnp.dot(mr, gref, preferred_element_type=jnp.float32)
    jnr = jnp.sqrt(jnp.sum(gmr * mr, axis=-1, keepdims=True))
    ref_bf = jnp.tanh(k[0] * fr / (jnr + EPS))
    assert jnp.allclose(out_bf16, ref_bf, atol=2.5e-2, rtol=0.0), "bf16 kernel mismatch"

    # TODO(synk): training-mode branch (lips_loss.backward on k_out**2) is an
    # optimizer side-effect, not part of the eval forward pass; not implemented.
    # TODO(synk): non-global-lips K_net (per-sample k MLP) not implemented
    # (module defaults use global_lips=True).
    print("KERNEL_OK")
</pallas_src>

<mosaic_0001>
module attributes {stable_mosaic.version = 11 : i64} {
  func.func @lipsnet_kernel(%arg0: i32, %arg1: memref<1xf32, #tpu.memory_space<smem>>, %arg2: memref<16x16xf32, #tpu.memory_space<vmem>>, %arg3: memref<16x32xf32, #tpu.memory_space<vmem>>, %arg4: memref<1x32xf32, #tpu.memory_space<vmem>>, %arg5: memref<32x8xf32, #tpu.memory_space<vmem>>, %arg6: memref<1x8xf32, #tpu.memory_space<vmem>>, %arg7: memref<32x32xf32, #tpu.memory_space<vmem>>, %arg8: memref<8x16xf32, #tpu.memory_space<vmem>>) attributes {dimension_semantics = [#tpu.dimension_semantics<parallel>], iteration_bounds = array<i64: 1>, scalar_prefetch = 0 : i64, scratch_operands = 0 : i64, tpu.core_type = #tpu.core_type<tc>, window_params = [{transform_indices = @transform_0, window_bounds = array<i64: 1>}, {transform_indices = @transform_1, window_bounds = array<i64: 16, 16>}, {pipeline_mode = #tpu.pipeline_mode<synchronous>, transform_indices = @transform_2, window_bounds = array<i64: 16, 32>}, {pipeline_mode = #tpu.pipeline_mode<synchronous>, transform_indices = @transform_3, window_bounds = array<i64: 1, 32>}, {pipeline_mode = #tpu.pipeline_mode<synchronous>, transform_indices = @transform_4, window_bounds = array<i64: 32, 8>}, {pipeline_mode = #tpu.pipeline_mode<synchronous>, transform_indices = @transform_5, window_bounds = array<i64: 1, 8>}, {pipeline_mode = #tpu.pipeline_mode<synchronous>, transform_indices = @transform_6, window_bounds = array<i64: 32, 32>}, {transform_indices = @transform_7, window_bounds = array<i64: 8, 16>}]} {
    %c0 = arith.constant 0 : index
    %0 = memref.load %arg1[%c0] : memref<1xf32, #tpu.memory_space<smem>>
    %c0_0 = arith.constant 0 : index
    %c0_1 = arith.constant 0 : index
    %1 = vector.load %arg2[%c0_0, %c0_1] : memref<16x16xf32, #tpu.memory_space<vmem>>, vector<16x16xf32>
    %c0_2 = arith.constant 0 : index
    %c0_3 = arith.constant 0 : index
    %2 = vector.load %arg3[%c0_2, %c0_3] : memref<16x32xf32, #tpu.memory_space<vmem>>, vector<16x32xf32>
    %c0_4 = arith.constant 0 : index
    %c0_5 = arith.constant 0 : index
    %3 = vector.load %arg4[%c0_4, %c0_5] : memref<1x32xf32, #tpu.memory_space<vmem>>, vector<1x32xf32>
    %c0_6 = arith.constant 0 : index
    %c0_7 = arith.constant 0 : index
    %4 = vector.load %arg5[%c0_6, %c0_7] : memref<32x8xf32, #tpu.memory_space<vmem>>, vector<32x8xf32>
    %c0_8 = arith.constant 0 : index
    %c0_9 = arith.constant 0 : index
    %5 = vector.load %arg6[%c0_8, %c0_9] : memref<1x8xf32, #tpu.memory_space<vmem>>, vector<1x8xf32>
    %c0_10 = arith.constant 0 : index
    %c0_11 = arith.constant 0 : index
    %6 = vector.load %arg7[%c0_10, %c0_11] : memref<32x32xf32, #tpu.memory_space<vmem>>, vector<32x32xf32>
    %cst = arith.constant dense<0.000000e+00> : vector<16x32xf32>
    %7 = tpu.matmul %1, %2, %cst {dimension_numbers = #tpu.dot_dimension_numbers<[1], [0], [0], [1], [0, 0, 1, 1], [], []>} : vector<16x16xf32>, vector<16x32xf32>, vector<16x32xf32> -> vector<16x32xf32>
    %8 = vector.broadcast %3 : vector<1x32xf32> to vector<16x32xf32>
    %9 = arith.addf %7, %8 : vector<16x32xf32>
    %cst_12 = arith.constant 0.000000e+00 : f32
    %10 = vector.broadcast %cst_12 : f32 to vector<16x32xf32>
    %11 = arith.maximumf %9, %10 : vector<16x32xf32>
    %cst_13 = arith.constant 0.000000e+00 : f32
    %12 = vector.broadcast %cst_13 : f32 to vector<16x32xf32>
    %13 = arith.cmpf ogt, %9, %12 : vector<16x32xf32>
    %14 = arith.extui %13 : vector<16x32xi1> to vector<16x32xi32>
    %15 = arith.sitofp %14 : vector<16x32xi32> to vector<16x32xf32>
    %cst_14 = arith.constant dense<0.000000e+00> : vector<16x8xf32>
    %16 = tpu.matmul %11, %4, %cst_14 {dimension_numbers = #tpu.dot_dimension_numbers<[1], [0], [0], [1], [0, 0, 1, 1], [], []>} : vector<16x32xf32>, vector<32x8xf32>, vector<16x8xf32> -> vector<16x8xf32>
    %17 = vector.broadcast %5 : vector<1x8xf32> to vector<16x8xf32>
    %18 = arith.addf %16, %17 : vector<16x8xf32>
    %cst_15 = arith.constant dense<0.000000e+00> : vector<16x32xf32>
    %19 = tpu.matmul %15, %6, %cst_15 {dimension_numbers = #tpu.dot_dimension_numbers<[1], [0], [0], [1], [0, 0, 1, 1], [], []>} : vector<16x32xf32>, vector<32x32xf32>, vector<16x32xf32> -> vector<16x32xf32>
    %20 = arith.mulf %19, %15 : vector<16x32xf32>
    %cst_16 = arith.constant dense<0.000000e+00> : vector<16xf32>
    %21 = vector.multi_reduction <add>, %20, %cst_16 [1] : vector<16x32xf32> to vector<16xf32>
    %22 = vector.shape_cast %21 : vector<16xf32> to vector<16x1xf32>
    %23 = math.sqrt %22 : vector<16x1xf32>
    %cst_17 = arith.constant 9.99999974E-5 : f32
    %24 = vector.broadcast %cst_17 : f32 to vector<16x1xf32>
    %25 = arith.addf %23, %24 : vector<16x1xf32>
    %26 = vector.broadcast %0 : f32 to vector<16x8xf32>
    %27 = arith.mulf %26, %18 : vector<16x8xf32>
    %28 = vector.broadcast %25 : vector<16x1xf32> to vector<16x8xf32>
    %29 = arith.divf %27, %28 : vector<16x8xf32>
    %30 = math.tanh %29 : vector<16x8xf32>
    %31 = tpu.transpose %30, [1, 0] : vector<16x8xf32> -> vector<8x16xf32>
    %c0_18 = arith.constant 0 : index
    %c0_19 = arith.constant 0 : index
    %32 = vector.load %arg8[%c0_18, %c0_19] : memref<8x16xf32, #tpu.memory_space<vmem>>, vector<8x16xf32>
    tpu.vector_store %arg8[%c0_18, %c0_19], %31 {strides = array<i32>} : memref<8x16xf32, #tpu.memory_space<vmem>>, vector<8x16xf32>,
    return
  }
  func.func @transform_0(%arg0: i32) -> i32 {
    %c0_i32 = arith.constant 0 : i32
    %c0_i32_0 = arith.constant 0 : i32
    return %c0_i32 : i32
  }
  func.func @transform_1(%arg0: i32) -> (i32, i32) {
    %c0_i32 = arith.constant 0 : i32
    %c0_i32_0 = arith.constant 0 : i32
    return %arg0, %c0_i32 : i32, i32
  }
  func.func @transform_2(%arg0: i32) -> (i32, i32) {
    %c0_i32 = arith.constant 0 : i32
    %c0_i32_0 = arith.constant 0 : i32
    %c0_i32_1 = arith.constant 0 : i32
    return %c0_i32, %c0_i32_0 : i32, i32
  }
  func.func @transform_3(%arg0: i32) -> (i32, i32) {
    %c0_i32 = arith.constant 0 : i32
    %c0_i32_0 = arith.constant 0 : i32
    %c0_i32_1 = arith.constant 0 : i32
    return %c0_i32, %c0_i32_0 : i32, i32
  }
  func.func @transform_4(%arg0: i32) -> (i32, i32) {
    %c0_i32 = arith.constant 0 : i32
    %c0_i32_0 = arith.constant 0 : i32
    %c0_i32_1 = arith.constant 0 : i32
    return %c0_i32, %c0_i32_0 : i32, i32
  }
  func.func @transform_5(%arg0: i32) -> (i32, i32) {
    %c0_i32 = arith.constant 0 : i32
    %c0_i32_0 = arith.constant 0 : i32
    %c0_i32_1 = arith.constant 0 : i32
    return %c0_i32, %c0_i32_0 : i32, i32
  }
  func.func @transform_6(%arg0: i32) -> (i32, i32) {
    %c0_i32 = arith.constant 0 : i32
    %c0_i32_0 = arith.constant 0 : i32
    %c0_i32_1 = arith.constant 0 : i32
    return %c0_i32, %c0_i32_0 : i32, i32
  }
  func.func @transform_7(%arg0: i32) -> (i32, i32) {
    %c0_i32 = arith.constant 0 : i32
    %c0_i32_0 = arith.constant 0 : i32
    return %c0_i32, %arg0 : i32, i32
  }
}

</mosaic_0001>

<bundles_post_ra>
// kernel: _lipsnet_forward.1
= control target key start
LH: loop header
LB: loop body
LE: loop exit
PB: predicated region body
PF: predicated region fallthrough
CT: control target
= control target key end

     0   :  { %vm49_vm0 = vcmask 130048   ;;  %s609_s0 = inlined_call_operand.<no memory space> [shape: f32[1], index: 0, kind: input, shape index: {}]   ;;  %s610_s1 = inlined_call_operand.vmem [shape: f32[16,16], index: 1, kind: input, shape index: {}]   ;;  %s611_s2 = inlined_call_operand.vmem [shape: f32[16,32], index: 2, kind: input, shape index: {}]   ;;  %s612_s3 = inlined_call_operand.vmem [shape: f32[1,32], index: 3, kind: input, shape index: {}]   ;;  %s613_s4 = inlined_call_operand.vmem [shape: f32[32,8], index: 4, kind: input, shape index: {}]   ;;  %s614_s5 = inlined_call_operand.vmem [shape: f32[1,8], index: 5, kind: input, shape index: {}]   ;;  %s615_s6 = inlined_call_operand.vmem [shape: f32[32,32], index: 6, kind: input, shape index: {}]   ;;  %s616_s7 = inlined_call_operand.hbm [shape: f32[8,16], index: 7, kind: output, shape index: {}]  }
   0x1   :  { %v31_v0 = vld [vmem:[%s611_s2] sm:$0xff]  ;;  %v32_v1 = vld [vmem:[%s611_s2 + $0x8] sm:$0xff] }
   0x2   :  { %v29_v2 = vld [vmem:[%s610_s1] sm:$0xff]  ;;  %v443_v3 = vpack.c.bf16 %v32_v1, %v31_v0  ;;  %v35_v5 = vld [vmem:[%s613_s4 + $0x8] sm:$0xff] }
   0x3   :  { %418 = vmatprep.mubr.msk.f32.mxu0 %vm49_vm0, %v29_v2  ;;  %v34_v4 = vld [vmem:[%s613_s4] sm:$0xff]  ;;  %v40_v8 = vld [vmem:[%s615_s6 + $0x8] sm:$0xff] }
   0x4   :  { %v447_v6 = vpack.c.bf16 %v35_v5, %v34_v4  ;;  %v39_v7 = vld [vmem:[%s615_s6] sm:$0xff] }
   0x5   :  { %13 = vsyncpa [#allocation4], 0  ;;  %444 = vmatprep.subr.bf16.mxu0 %v443_v3  ;;  %v455_v9 = vpack.c.bf16 %v40_v8, %v39_v7  ;;  %v30_v10 = vld [vmem:[%s610_s1 + $0x8] sm:$0xff]  ;;  %v36_v11 = vld [vmem:[%s613_s4 + $0x10] sm:$0xff]  ;;  %vm145_vm2 = vcmask 261120   ;;  %v501_v24 = vmov 0.0   ;;  %v332_v51 = vstv %s609_s0 }
   0x6   :  { %446 = vmatpush3.bf16.msra.mxu0 %v443_v3  ;;  %448 = vmatprep.subr.bf16.mxu1 %v447_v6  ;;  %v37_v12 = vld [vmem:[%s613_s4 + $0x18] sm:$0xff]  ;;  %v41_v14 = vld [vmem:[%s615_s6 + $0x10] sm:$0xff]  ;;  %v388_v17 = vld [vmem:[%s612_s3] ss:$0 sm:$0xff] }
   0x7   :  { %456 = vmatprep.subr.bf16.mxu0 %v455_v9  ;;  %450 = vmatpush3.bf16.msra.mxu1 %v447_v6  ;;  %v451_v13 = vpack.c.bf16 %v37_v12, %v36_v11  ;;  %v42_v15 = vld [vmem:[%s615_s6 + $0x18] sm:$0xff]  ;;  %v393_v48 = vld [vmem:[%s614_s5] ss:$0 sm:$0xff]  ;;  %s502_s5 = smov [#allocation3]  }
   0x8   :  { %v459_v16 = vpack.c.bf16 %v42_v15, %v41_v14  ;;  %s380_s26 = sshll.u32 %s502_s5, 4  ;;  %s381_s26 = int_to_ptr.vmem [resolvable:$true] %s380_s26 }
   0x9   :  { %419 = vmatmul.mubr.msk.f32.vlgmr.msra.gmra.mrb[0].mxu0 %vm49_vm0, %v30_v10  ;;  %452 = vmatprep.subr.bf16.mxu1 %v451_v13  ;;  %s477_s0 = scalar_lea.vmem %s381_s26, 128  ;;  %p482_p1 = scmp.lt.s32.totalorder %s381_s26, %s381_s26 }
   0xa   :  { %458 = vmatpush3.bf16.msra.mxu0 %v455_v9  ;;  %p478_p0 = scmp.ne.s32.totalorder %s381_s26, %s477_s0  ;;  %p483_p2 = scmp.lt.s32.totalorder %s477_s0, %s477_s0 }
   0xb   :  { %460 = vmatprep.subr.bf16.mxu0 %v459_v16  ;;  %454 = vmatpush3.bf16.msra.mxu1 %v451_v13 }
   0xc   :  { %p484_p3 = por %p483_p2, %p482_p1 }
   0xe   :  { %462 = vmatpush3.bf16.msra.mxu0 %v459_v16  ;;  %p485_p4 = pnand %p484_p3, %p478_p0 }
  0xdc   :  { %v420_v18 = vpop.f32.mrb[0].mxu0 }
  0xdd   :  { %v128_v19 = vadd.f32 %v420_v18, %v388_v17  ;;  %v122_v20 = vpop.f32.mrb[1].mxu0 }
  0xde   :  { %v123_v21 = vadd.f32 %v388_v17, %v122_v20 }
  0xdf   :  { %vm134_vm1 = vcmp.gt.f32.partialorder %v128_v19, 0.0  ;;  %v132_v23 = vmax.f32 %v128_v19, 0.0 }
  0xe0   :  { %vm133_vm3 = vcmp.gt.f32.partialorder %v123_v21, 0.0  ;;  %v131_v22 = vmax.f32 %v123_v21, 0.0  ;;  %v392_v26 = vsel %vm134_vm1, 1.0, %v501_v24 }
  0xe1   :  { %v391_v25 = vsel %vm133_vm3, 1.0, %v501_v24 }
  0xe2   :  { %429 = vmatprep.mubr.msk.f32.mxu1 %vm145_vm2, %v131_v22  ;;  %440 = vmatprep.mubr.msk.f32.mxu0 %vm145_vm2, %v391_v25 }
  0xe3   :  { %430 = vmatmul.mubr.msk.f32.vlgmr.msra.gmra.mrb[0].mxu1 %vm145_vm2, %v132_v23  ;;  %441 = vmatmul.mubr.msk.f32.vlgmr.msra.gmra.mrb[2].mxu0 %vm145_vm2, %v392_v26 }
 0x1b6   :  { %v431_v27 = vpop.f32.mrb[0].mxu1  ;;  %v442_v28 = vpop.f32.mrb[2].mxu0 }
 0x1b7   :  { %v218_v29 = vpop.f32.mrb[1].mxu1  ;;  %v299_v30 = vpop.f32.mrb[3].mxu0  ;;  %v309_v32 = vmul.f32 %v442_v28, %v392_v26  ;;  %v224_v52 = vadd.f32 %v431_v27, %v393_v48 }
 0x1b8   :  { %v308_v31 = vmul.f32 %v391_v25, %v299_v30  ;;  %v219_v50 = vadd.f32 %v393_v48, %v218_v29 }
 0x1b9   :  { %v313_v34 = vsel %vm145_vm2, %v309_v32, 0.0  ;;  %v334_v56 = vmul.f32 %v332_v51, %v224_v52 }
 0x1ba   :  { %v310_v33 = vsel %vm145_vm2, %v308_v31, 0.0  ;;  %v333_v53 = vmul.f32 %v332_v51, %v219_v50 }
 0x1bb   :  { %311 = vadd.xlane.f32.xlu0 %v310_v33 }
 0x1bf   :  { %314 = vadd.xlane.f32.xlu0 %v313_v34 }
 0x248   :  { %v312_v35 = vpop.xlane.xlu0 %311 }
 0x249   :  { %465 = vrsqrt.f32 %v312_v35  ;;  %vm318_vm4 = vcmp.eq.f32.partialorder %v312_v35, inf  ;;  %v321_v39 = vand.u32 2147483648, %v312_v35  ;;  %vm320_vm5 = vcmp.eq.f32.partialorder %v312_v35, 0.0 }
 0x24c   :  { %v315_v36 = vpop.xlane.xlu0 %314 }
 0x24d   :  { %467 = vrsqrt.f32 %v315_v36  ;;  %vm325_vm6 = vcmp.eq.f32.partialorder %v315_v36, inf  ;;  %v328_v45 = vand.u32 2147483648, %v315_v36  ;;  %vm327_vm7 = vcmp.eq.f32.partialorder %v315_v36, 0.0 }
 0x253   :  { %v466_v37 = vpop.eup %465 }
 0x254   :  { %v317_v38 = vmul.f32 %v466_v37, %v312_v35 }
 0x256   :  { %v319_v40 = vsel %vm318_vm4, %v312_v35, %v317_v38 }
 0x257   :  { %v468_v41 = vpop.eup %467  ;;  %v322_v42 = vsel %vm320_vm5, %v321_v39, %v319_v40 }
 0x258   :  { %v324_v43 = vmul.f32 %v468_v41, %v315_v36  ;;  %v330_v44 = vadd.f32 0.0001, %v322_v42 }
 0x25a   :  { %v326_v46 = vsel %vm325_vm6, %v315_v36, %v324_v43  ;;  %469 = vrcp.f32 %v330_v44 }
 0x25b   :  { %v329_v47 = vsel %vm327_vm7, %v328_v45, %v326_v46 }
 0x25c   :  { %v331_v49 = vadd.f32 0.0001, %v329_v47 }
 0x25e   :  { %471 = vrcp.f32 %v331_v49 }
 0x264   :  { %v470_v54 = vpop.eup %469 }
 0x265   :  { %v336_v55 = vmul.f32 %v470_v54, %v333_v53 }
 0x267   :  { %473 = vtanh.f32 %v336_v55 }
 0x268   :  { %v472_v57 = vpop.eup %471 }
 0x269   :  { %v338_v58 = vmul.f32 %v472_v57, %v334_v56 }
 0x26b   :  { %475 = vtanh.f32 %v338_v58 }
 0x271   :  { %v474_v59 = vpop.eup %473 }
 0x272   :  { %341 = vxpose.xlu1.b32.start [1/2] (short) (narrow) %v474_v59, 8 }
 0x275   :  { %v476_v60 = vpop.eup %475 }
 0x276   :  { %342 = vxpose.xlu1.b32.end [2/2] (short) (narrow) %v476_v60, 8 }
 0x2f2   :  { %v357_v61 = vpop.trf.xlu1 }
 0x2f3   :  { %373 = vst.msk [vmem:[#allocation3] sm:$0xff] %vm49_vm0, %v357_v61 }
 0x2f4   :  { %488 = shalt.err (!%p485_p4)
}
 0x2f5   :  { %s489_s29 = scalar_lea.hbm %s616_s7, 128 }
 0x2f6   :  { %p490_p5 = scmp.ne.s32.totalorder %s616_s7, %s489_s29  ;;  %p493_p6 = scmp.lt.u32.totalorder %s489_s29, %s616_s7 }
 0x2f8   :  { %p495_p7 = pnand %p493_p6, %p490_p5 }
 0x2fa   :  { %498 = shalt.err (!%p495_p7)
}
 0x2fb   :  { %383 = dma.vmem_to_hbm [thread:$0]  %s381_s26, 128, %s616_s7, [#allocation4]  }
 0x2fc   :  { %499 = dma.done.wait [#allocation4], 128  }
 0x2fd   :  { %500 = vsyncadd [#allocation4], 4294967168 }
 0x2fe   :  { %387 = vsyncpa [#allocation4], 1 }

</bundles_post_ra>
